<compile_context>
chip_gen: v5e
topology: v5e:2x2
jax: 0.10.0
libtpu: 0.0.40
codegen_flags: <defaults>
</compile_context>

<pallas_src>
import functools
import math

import jax
import jax.numpy as jnp
from jax import lax
from jax.experimental import pallas as pl
from jax.experimental.pallas import tpu as pltpu


def _round_up(n, m):
    return ((n + m - 1) // m) * m


# ---------------------------------------------------------------------------
# Hardware-generation awareness.
# ---------------------------------------------------------------------------
@functools.lru_cache(maxsize=None)
def _hw_config():
    """Returns (vmem_budget_bytes, n_tensorcores_on_parallel_axis, is_v7x)."""
    try:
        kind = jax.devices()[0].device_kind.lower()
    except Exception:  # pragma: no cover
        kind = ""
    if "v7" in kind:
        # 64 MiB physical VMEM per TC: cap well below it so Mosaic temporaries fit.
        return 48 * 2**20, 2, True
    if "v6" in kind or "v5" in kind:
        # 128 MiB physical VMEM, single TensorCore per chip.
        return 100 * 2**20, 1, False
    # Unknown chip (e.g. v3/v4 megacore): conservative budget, assume 2 cores.
    return 32 * 2**20, 2, False


def _step_vmem_bytes(bb, Lp, Dp, Hp, za_itemsize, single_buffer_weights):
    """VMEM footprint of one grid step, from the actual live intermediates."""
    R = bb * Lp
    blocks = (2 * R * Dp * 2                 # x block, bf16, double-buffered
              + 2 * bb * Hp * 4              # s block, f32, double-buffered
              + 2 * R * Hp * za_itemsize)    # za block, double-buffered
    wmul = 1 if single_buffer_weights else 2
    weights = wmul * ((Dp * 2 * Hp + 3 * Hp * Hp) * 2
                      + (2 * Hp + 8 * Hp + 8) * 4)
    # live f32 intermediates: h (R,2Hp) + z1/s1 slices + z + z3/za  (~7*Hp per row)
    interm = R * 7 * Hp * 4
    return blocks + weights + interm


def _choose_block_batch(B, Lp, Dp, Hp, za_itemsize, *, budget, n_tc,
                        single_buffer_weights, max_rows=2048):
    """Largest per-step batch block that fits VMEM / row targets; the final block
    is chosen to minimize batch padding for that grid-step count."""
    bb_max = 1
    for bb in range(2, B + 1):
        if bb * Lp > max_rows:
            break
        if _step_vmem_bytes(bb, Lp, Dp, Hp, za_itemsize,
                            single_buffer_weights) > budget:
            break
        # Keep >= n_tc grid steps only when there are multiple TensorCores (v7x).
        if n_tc >= 2 and B >= n_tc and pl.cdiv(B, bb) < n_tc:
            break
        bb_max = bb
    nsteps = pl.cdiv(B, bb_max)
    bb = pl.cdiv(B, nsteps)          # same step count, least batch padding
    return bb, nsteps


# ---------------------------------------------------------------------------
# Pallas kernel: one grid step == one block of BB batch elements (BB*Lp rows).
# ---------------------------------------------------------------------------
def _attention_set_kernel(
    x_ref,        # (BB, Lp, Dp)     bf16
    w_in_ref,     # (Dp, 2*Hp)       bf16   [e_w1 | s_w1]
    b_in_ref,     # (1, 2*Hp)        f32    [e_b1 | s_b1]
    e_w2_ref,     # (Hp, Hp)         bf16
    a_w1_ref,     # (Hp, Hp)         bf16
    a_w2_ref,     # (Hp, Hp)         bf16
    b_pack_ref,   # (8, Hp)          f32    rows: e_b2, a_b1, a_b2, s_w2-row, 0...
    s_b2_ref,     # (1, 1)           f32
    s_out_ref,    # (1, BB, Hp)      f32
    za_out_ref,   # (BB, Lp, Hp)     f32 or bf16
    *,
    seq_len,
):
    BB, Lp, Dp = x_ref.shape
    Hp = e_w2_ref.shape[0]
    f32, bf16 = jnp.float32, jnp.bfloat16

    x = x_ref[...].reshape(BB * Lp, Dp)                       # (R, Dp) bf16

    # Fused first layers of e(.) and s(.): single (R, Dp) @ (Dp, 2*Hp) MXU pass.
    h = jnp.dot(x, w_in_ref[...], preferred_element_type=f32)
    h = jnp.maximum(h + b_in_ref[...], 0.0)                   # (R, 2*Hp) f32
    z1 = h[:, :Hp]
    s1 = h[:, Hp:]

    # e second layer: bf16 operands, f32 accumulate.
    z = jnp.dot(z1.astype(bf16), e_w2_ref[...], preferred_element_type=f32)
    z = jnp.maximum(z + b_pack_ref[0:1, :], 0.0)               # (R, Hp) f32
    z3 = z.reshape(BB, Lp, Hp)

    # s second layer (num_outputs == 1): VPU multiply + lane reduce, no N=1 matmul.
    s2 = jnp.sum(s1 * b_pack_ref[3:4, :], axis=-1, keepdims=True) + s_b2_ref[...]
    s2 = jnp.maximum(s2, 0.0).reshape(BB, Lp, 1)               # (BB, Lp, 1) f32
    if seq_len != Lp:
        # Mask padded sequence rows out of the permutation-invariant pooling.
        row = lax.broadcasted_iota(jnp.int32, (BB, Lp, 1), 1)
        s2 = jnp.where(row < seq_len, s2, 0.0)

    # Per-set pooling: sv[b, :] = sum_l s2[b, l] * z[b, l, :]
    sv = jnp.sum(s2 * z3, axis=1)                              # (BB, Hp) f32

    # a(.) MLP, batched over the BB resident sets.
    sv = jnp.dot(sv.astype(bf16), a_w1_ref[...], preferred_element_type=f32)
    sv = jnp.maximum(sv + b_pack_ref[1:2, :], 0.0)
    sv = jnp.dot(sv.astype(bf16), a_w2_ref[...], preferred_element_type=f32)
    sv = jnp.maximum(sv + b_pack_ref[2:3, :], 0.0)             # (BB, Hp) f32

    # Attention weights and attention-applied element embeddings.
    a = jnp.sum(z3 * sv[:, None, :], axis=-1, keepdims=True)   # (BB, Lp, 1)
    za = a * z3                                                # (BB, Lp, Hp)

    s_out_ref[...] = sv[None, :, :]
    za_out_ref[...] = za.astype(za_out_ref.dtype)


# ---------------------------------------------------------------------------
# Parameter packing: pad to lane multiples, fuse D->H projections, pack biases.
# ---------------------------------------------------------------------------
def pack_params(p):
    D, H = p["e_w1"].shape
    num_outputs = p["s_w2"].shape[1]
    if num_outputs != 1:
        # TODO(synk): generalize to num_outputs > 1 (the catalog network always uses 1).
        raise NotImplementedError("kernel specializes num_outputs == 1")
    Dp = _round_up(D, 128)
    Hp = _round_up(H, 128)
    f32, bf16 = jnp.float32, jnp.bfloat16

    w_in = jnp.zeros((Dp, 2 * Hp), f32)
    w_in = w_in.at[:D, :H].set(p["e_w1"]).at[:D, Hp:Hp + H].set(p["s_w1"])

    b_in = jnp.zeros((1, 2 * Hp), f32)
    b_in = b_in.at[0, :H].set(p["e_b1"]).at[0, Hp:Hp + H].set(p["s_b1"])

    def pad_sq(w):
        return jnp.zeros((Hp, Hp), f32).at[:H, :H].set(w).astype(bf16)

    b_pack = jnp.zeros((8, Hp), f32)
    b_pack = (b_pack.at[0, :H].set(p["e_b2"])
                     .at[1, :H].set(p["a_b1"])
                     .at[2, :H].set(p["a_b2"])
                     .at[3, :H].set(p["s_w2"][:, 0]))

    return dict(
        w_in=w_in.astype(bf16), b_in=b_in,
        e_w2=pad_sq(p["e_w2"]), a_w1=pad_sq(p["a_w1"]), a_w2=pad_sq(p["a_w2"]),
        b_pack=b_pack, s_b2=p["s_b2"].reshape(1, 1).astype(f32),
        D=D, H=H, Dp=Dp, Hp=Hp,
    )


def _pad_input(x, Dp):
    """(B, L, D) f32 -> (B, Lp, Dp) bf16, zero-padded lanes / sequence rows."""
    B, L, D = x.shape
    Lp = _round_up(L, 8)
    xb = x.astype(jnp.bfloat16)
    if (Lp, Dp) != (L, D):
        xb = jnp.pad(xb, ((0, 0), (0, Lp - L), (0, Dp - D)))
    return xb


# ---------------------------------------------------------------------------
# Core wrapper in the padded / bf16 layout (used for layer chaining).
# ---------------------------------------------------------------------------
def _attention_set_layer_padded(xb, packed, *, seq_len, za_dtype=jnp.float32,
                                block_batch=None):
    """xb: (B, Lp, Dp) bf16, Lp % 8 == 0, padded feature lanes are zero.
    Returns (s_pad (Bpad, Hp) f32, za_pad (Bpad, Lp, Hp) za_dtype), Bpad >= B."""
    B, Lp, Dp = xb.shape
    Hp = packed["Hp"]
    assert Dp == packed["Dp"], "input lane padding does not match packed params"
    assert Lp % 8 == 0

    budget, n_tc, is_v7x = _hw_config()
    za_itemsize = jnp.dtype(za_dtype).itemsize
    single_buffer_weights = is_v7x   # weights never change across grid steps

    if block_batch is None:
        BB, nsteps = _choose_block_batch(
            B, Lp, Dp, Hp, za_itemsize, budget=budget, n_tc=n_tc,
            single_buffer_weights=single_buffer_weights)
    else:
        BB = block_batch
        nsteps = pl.cdiv(B, BB)
    Bpad = BB * nsteps
    if Bpad != B:
        # Per-batch computation is independent; padded rows are sliced off by caller.
        xb = jnp.pad(xb, ((0, Bpad - B), (0, 0), (0, 0)))

    def _const(shape):
        nd = len(shape)
        idx = lambda b: (0,) * nd
        if single_buffer_weights:
            try:
                # Single-resident weight copy (halves their VMEM on v7x's 64 MiB).
                return pl.BlockSpec(shape, idx, pipeline_mode=pl.Buffered(1))
            except TypeError:
                pass
        return pl.BlockSpec(shape, idx)

    in_specs = [
        pl.BlockSpec((BB, Lp, Dp), lambda b: (b, 0, 0)),
        _const((Dp, 2 * Hp)),
        _const((1, 2 * Hp)),
        _const((Hp, Hp)),
        _const((Hp, Hp)),
        _const((Hp, Hp)),
        _const((8, Hp)),
        _const((1, 1)),
    ]
    out_specs = [
        pl.BlockSpec((1, BB, Hp), lambda b: (b, 0, 0)),
        pl.BlockSpec((BB, Lp, Hp), lambda b: (b, 0, 0)),
    ]

    # Only raise the scoped-VMEM limit when the real footprint needs it.
    est = _step_vmem_bytes(BB, Lp, Dp, Hp, za_itemsize, single_buffer_weights)
    vmem_limit = None
    if est > 16 * 2**20:
        vmem_limit = int(min(budget, est + est // 4 + 2 * 2**20))

    R = Bpad * Lp
    flops = (2 * R * Dp * (2 * Hp)           # fused e1/s1 projection
             + 2 * R * Hp * Hp               # e second layer
             + 2 * 2 * Bpad * Hp * Hp        # a-MLP (two layers)
             + 8 * R * Hp)                   # VPU reductions / za
    weight_bytes = (Dp * 2 * Hp + 3 * Hp * Hp) * 2 + (2 * Hp + 8 * Hp + 8) * 4
    bytes_accessed = (xb.size * 2 + weight_bytes
                      + Bpad * Hp * 4 + R * Hp * za_itemsize)

    s_pad, za_pad = pl.pallas_call(
        functools.partial(_attention_set_kernel, seq_len=seq_len),
        grid_spec=pltpu.PrefetchScalarGridSpec(
            num_scalar_prefetch=0,
            grid=(nsteps,),
            in_specs=in_specs,
            out_specs=out_specs,
        ),
        out_shape=(
            jax.ShapeDtypeStruct((nsteps, BB, Hp), jnp.float32),
            jax.ShapeDtypeStruct((Bpad, Lp, Hp), za_dtype),
        ),
        compiler_params=pltpu.CompilerParams(
            dimension_semantics=("parallel",),
            vmem_limit_bytes=vmem_limit,
        ),
        cost_estimate=pl.CostEstimate(
            flops=int(flops), transcendentals=0,
            bytes_accessed=int(bytes_accessed)),
    )(xb, packed["w_in"], packed["b_in"], packed["e_w2"], packed["a_w1"],
      packed["a_w2"], packed["b_pack"], packed["s_b2"])

    return s_pad.reshape(Bpad, Hp), za_pad


# ---------------------------------------------------------------------------
# Public wrappers matching the PyTorch module interfaces.
# ---------------------------------------------------------------------------
def custom_attention_set_layer(x, packed, block_batch=None):
    """One CustomAttentionSetLayer forward.  x: (B, L, D) f32.
    Returns (s (B, H, 1) f32, za (B, L, H) f32)."""
    B, L, D = x.shape
    assert D == packed["D"], "input feature dim does not match packed params"
    xb = _pad_input(x, packed["Dp"])
    s_pad, za_pad = _attention_set_layer_padded(
        xb, packed, seq_len=L, za_dtype=jnp.float32, block_batch=block_batch)
    s = s_pad[:B, :packed["H"]][:, :, None]        # (B, H, 1) like PyTorch
    za = za_pad[:B, :L, :packed["H"]]
    return s, za


def custom_attention_set_embedder(x, packed_layers):
    """CustomAttentionSetEmbedder.forward: stacked attention set layers.

    Intermediate za tensors stay in the padded (Lp, Hp) bf16 layout between
    layers (no slice / re-pad / re-cast HBM round trips); the final layer emits
    f32 and the result is sliced back to PyTorch layout exactly once."""
    B, L, _ = x.shape
    xb = _pad_input(x, packed_layers[0]["Dp"])
    s_pad, za_pad = None, xb
    for i, packed in enumerate(packed_layers):
        if i:
            assert packed["D"] == packed_layers[i - 1]["H"]
            assert packed["Dp"] == packed_layers[i - 1]["Hp"]
        last = i == len(packed_layers) - 1
        s_pad, za_pad = _attention_set_layer_padded(
            za_pad, packed, seq_len=L,
            za_dtype=jnp.float32 if last else jnp.bfloat16)
    H = packed_layers[-1]["H"]
    s = s_pad[:B, :H][:, :, None]
    za = za_pad[:B, :L, :H]
    return s, za


# ---------------------------------------------------------------------------
# Deterministic parameter init (PyTorch Linear-style U(-1/sqrt(fan_in), +)).
# Weights stored (in, out); biases stored as vectors.
# ---------------------------------------------------------------------------
def init_params(key, dim_input, num_outputs, dim_hidden):
    layer_defs = {
        "e_w1": (dim_input, dim_hidden), "e_b1": (dim_hidden,),
        "e_w2": (dim_hidden, dim_hidden), "e_b2": (dim_hidden,),
        "s_w1": (dim_input, dim_hidden), "s_b1": (dim_hidden,),
        "s_w2": (dim_hidden, num_outputs), "s_b2": (num_outputs,),
        "a_w1": (dim_hidden, dim_hidden), "a_b1": (dim_hidden,),
        "a_w2": (dim_hidden, dim_hidden), "a_b2": (dim_hidden,),
    }
    params = {}
    keys = jax.random.split(key, len(layer_defs))
    for k, (name, shp) in zip(keys, layer_defs.items()):
        if name[2] == "w":
            fan_in = shp[0]
        else:
            fan_in = layer_defs[name.replace("b", "w")][0]
        bound = 1.0 / math.sqrt(fan_in)
        params[name] = jax.random.uniform(k, shp, jnp.float32, -bound, bound)
    return params


# ---------------------------------------------------------------------------
# Pure-JAX reference mirroring the kernel's numerics (bf16 MXU operands,
# f32 accumulation, f32 VPU math) — matches the PyTorch forward semantics.
# ---------------------------------------------------------------------------
def reference_forward(x, p):
    f32, bf16 = jnp.float32, jnp.bfloat16

    def mm(a, w):  # bf16 x bf16 -> f32 accumulate, like the in-kernel MXU dots
        return lax.dot_general(
            a.astype(bf16), w.astype(bf16),
            (((a.ndim - 1,), (0,)), ((), ())),
            preferred_element_type=f32)

    z = jnp.maximum(mm(x, p["e_w1"]) + p["e_b1"], 0.0)
    z = jnp.maximum(mm(z, p["e_w2"]) + p["e_b2"], 0.0)                     # (B, L, H)
    s1 = jnp.maximum(mm(x, p["s_w1"]) + p["s_b1"], 0.0)                    # (B, L, H)
    s2 = jnp.maximum(
        jnp.sum(s1 * p["s_w2"][:, 0], axis=-1, keepdims=True) + p["s_b2"], 0.0)
    sv = jnp.sum(s2 * z, axis=1, keepdims=True)                            # (B, 1, H)
    sv = jnp.maximum(mm(sv, p["a_w1"]) + p["a_b1"], 0.0)
    sv = jnp.maximum(mm(sv, p["a_w2"]) + p["a_b2"], 0.0)                   # (B, 1, H)
    s = jnp.swapaxes(sv, 1, 2)                                             # (B, H, 1)
    a = jnp.sum(z * sv, axis=-1, keepdims=True)                            # (B, L, 1)
    za = a * z                                                             # (B, L, H)
    return s, za


if __name__ == "__main__":
    B, L, D, H, NUM_OUT = 2, 8, 16, 32, 1

    key = jax.random.PRNGKey(0)
    k_x, k_p, k_e, k_m = jax.random.split(key, 4)

    # --- single CustomAttentionSetLayer ---
    x = jax.random.normal(k_x, (B, L, D), jnp.float32)
    params = init_params(k_p, D, NUM_OUT, H)
    packed = pack_params(params)

    s, za = custom_attention_set_layer(x, packed)
    s = jax.block_until_ready(s)
    za = jax.block_until_ready(za)

    s_ref, za_ref = reference_forward(x, params)
    assert s.shape == (B, H, 1) and za.shape == (B, L, H)
    assert jnp.allclose(s, s_ref, atol=1e-3, rtol=1e-3), float(jnp.max(jnp.abs(s - s_ref)))
    assert jnp.allclose(za, za_ref, atol=1e-3, rtol=1e-3), float(jnp.max(jnp.abs(za - za_ref)))

    # --- ragged seq_len (L % 8 != 0) and odd batch: exercises the in-kernel L mask
    #     and the batch-padding path ---
    Bm, Lm = 3, 5
    xm = jax.random.normal(k_m, (Bm, Lm, D), jnp.float32)
    sm, zam = custom_attention_set_layer(xm, packed)
    sm = jax.block_until_ready(sm)
    zam = jax.block_until_ready(zam)
    sm_ref, zam_ref = reference_forward(xm, params)
    assert sm.shape == (Bm, H, 1) and zam.shape == (Bm, Lm, H)
    assert jnp.allclose(sm, sm_ref, atol=1e-3, rtol=1e-3), float(jnp.max(jnp.abs(sm - sm_ref)))
    assert jnp.allclose(zam, zam_ref, atol=1e-3, rtol=1e-3), float(jnp.max(jnp.abs(zam - zam_ref)))

    # --- CustomAttentionSetEmbedder: 4 stacked layers chained in padded bf16 layout ---
    E = H  # offer_embedding_dim in the catalog network
    xe = jax.random.normal(k_e, (B, L, E), jnp.float32)
    layer_keys = jax.random.split(k_p, 4)
    layer_params = [init_params(layer_keys[i], E, 1, E) for i in range(4)]
    layer_packed = [pack_params(p) for p in layer_params]

    s4, za4 = custom_attention_set_embedder(xe, layer_packed)
    s4 = jax.block_until_ready(s4)
    za4 = jax.block_until_ready(za4)

    s4_ref, za4_ref = None, xe
    for p in layer_params:
        s4_ref, za4_ref = reference_forward(za4_ref, p)
    # looser tolerance: bf16 requantization of activations between layers can diverge
    # by one bf16 ulp between the kernel path and the reference path.
    assert jnp.allclose(s4, s4_ref, atol=1e-2, rtol=1e-2), float(jnp.max(jnp.abs(s4 - s4_ref)))
    assert jnp.allclose(za4, za4_ref, atol=1e-2, rtol=1e-2), float(jnp.max(jnp.abs(za4 - za4_ref)))

    print("KERNEL_OK")
</pallas_src>

<mosaic_0001>
module attributes {stable_mosaic.version = 11 : i64} {
  func.func @_attention_set_kernel(%arg0: i32, %arg1: memref<1x8x128xbf16, #tpu.memory_space<vmem>>, %arg2: memref<128x256xbf16, #tpu.memory_space<vmem>>, %arg3: memref<1x256xf32, #tpu.memory_space<vmem>>, %arg4: memref<128x128xbf16, #tpu.memory_space<vmem>>, %arg5: memref<128x128xbf16, #tpu.memory_space<vmem>>, %arg6: memref<128x128xbf16, #tpu.memory_space<vmem>>, %arg7: memref<8x128xf32, #tpu.memory_space<vmem>>, %arg8: memref<1x1xf32, #tpu.memory_space<vmem>>, %arg9: memref<1x1x128xf32, #tpu.memory_space<vmem>>, %arg10: memref<1x8x128xf32, #tpu.memory_space<vmem>>) attributes {dimension_semantics = [#tpu.dimension_semantics<parallel>], iteration_bounds = array<i64: 2>, scalar_prefetch = 0 : i64, scratch_operands = 0 : i64, tpu.core_type = #tpu.core_type<tc>, window_params = [{transform_indices = @transform_0, window_bounds = array<i64: 1, 8, 128>}, {pipeline_mode = #tpu.pipeline_mode<synchronous>, transform_indices = @transform_1, window_bounds = array<i64: 128, 256>}, {pipeline_mode = #tpu.pipeline_mode<synchronous>, transform_indices = @transform_2, window_bounds = array<i64: 1, 256>}, {pipeline_mode = #tpu.pipeline_mode<synchronous>, transform_indices = @transform_3, window_bounds = array<i64: 128, 128>}, {pipeline_mode = #tpu.pipeline_mode<synchronous>, transform_indices = @transform_4, window_bounds = array<i64: 128, 128>}, {pipeline_mode = #tpu.pipeline_mode<synchronous>, transform_indices = @transform_5, window_bounds = array<i64: 128, 128>}, {pipeline_mode = #tpu.pipeline_mode<synchronous>, transform_indices = @transform_6, window_bounds = array<i64: 8, 128>}, {pipeline_mode = #tpu.pipeline_mode<synchronous>, transform_indices = @transform_7, window_bounds = array<i64: 1, 1>}, {transform_indices = @transform_8, window_bounds = array<i64: 1, 1, 128>}, {transform_indices = @transform_9, window_bounds = array<i64: 1, 8, 128>}]} {
    %c0 = arith.constant 0 : index
    %c0_0 = arith.constant 0 : index
    %c0_1 = arith.constant 0 : index
    %0 = vector.load %arg1[%c0, %c0_0, %c0_1] : memref<1x8x128xbf16, #tpu.memory_space<vmem>>, vector<1x8x128xbf16>
    %1 = vector.shape_cast %0 : vector<1x8x128xbf16> to vector<8x128xbf16>
    %c0_2 = arith.constant 0 : index
    %c0_3 = arith.constant 0 : index
    %2 = vector.load %arg2[%c0_2, %c0_3] : memref<128x256xbf16, #tpu.memory_space<vmem>>, vector<128x256xbf16>
    %cst = arith.constant dense<0.000000e+00> : vector<8x256xf32>
    %3 = tpu.matmul %1, %2, %cst {dimension_numbers = #tpu.dot_dimension_numbers<[1], [0], [0], [1], [0, 0, 1, 1], [], []>} : vector<8x128xbf16>, vector<128x256xbf16>, vector<8x256xf32> -> vector<8x256xf32>
    %c0_4 = arith.constant 0 : index
    %c0_5 = arith.constant 0 : index
    %4 = vector.load %arg3[%c0_4, %c0_5] : memref<1x256xf32, #tpu.memory_space<vmem>>, vector<1x256xf32>
    %5 = vector.broadcast %4 : vector<1x256xf32> to vector<8x256xf32>
    %6 = arith.addf %3, %5 : vector<8x256xf32>
    %cst_6 = arith.constant 0.000000e+00 : f32
    %7 = vector.broadcast %cst_6 : f32 to vector<8x256xf32>
    %8 = arith.maximumf %6, %7 : vector<8x256xf32>
    %9 = vector.extract_strided_slice %8 {offsets = [0, 0], sizes = [8, 128], strides = [1, 1]} : vector<8x256xf32> to vector<8x128xf32>
    %10 = vector.extract_strided_slice %8 {offsets = [0, 128], sizes = [8, 128], strides = [1, 1]} : vector<8x256xf32> to vector<8x128xf32>
    %11 = arith.truncf %9 : vector<8x128xf32> to vector<8x128xbf16>
    %c0_7 = arith.constant 0 : index
    %c0_8 = arith.constant 0 : index
    %12 = vector.load %arg4[%c0_7, %c0_8] : memref<128x128xbf16, #tpu.memory_space<vmem>>, vector<128x128xbf16>
    %cst_9 = arith.constant dense<0.000000e+00> : vector<8x128xf32>
    %13 = tpu.matmul %11, %12, %cst_9 {dimension_numbers = #tpu.dot_dimension_numbers<[1], [0], [0], [1], [0, 0, 1, 1], [], []>} : vector<8x128xbf16>, vector<128x128xbf16>, vector<8x128xf32> -> vector<8x128xf32>
    %c0_10 = arith.constant 0 : index
    %c0_11 = arith.constant 0 : index
    %14 = vector.load %arg7[%c0_10, %c0_11] : memref<8x128xf32, #tpu.memory_space<vmem>>, vector<1x128xf32>
    %15 = vector.broadcast %14 : vector<1x128xf32> to vector<8x128xf32>
    %16 = arith.addf %13, %15 : vector<8x128xf32>
    %cst_12 = arith.constant 0.000000e+00 : f32
    %17 = vector.broadcast %cst_12 : f32 to vector<8x128xf32>
    %18 = arith.maximumf %16, %17 : vector<8x128xf32>
    %19 = vector.shape_cast %18 : vector<8x128xf32> to vector<1x8x128xf32>
    %c3 = arith.constant 3 : index
    %c0_13 = arith.constant 0 : index
    %20 = vector.load %arg7[%c3, %c0_13] : memref<8x128xf32, #tpu.memory_space<vmem>>, vector<1x128xf32>
    %21 = vector.broadcast %20 : vector<1x128xf32> to vector<8x128xf32>
    %22 = arith.mulf %10, %21 : vector<8x128xf32>
    %cst_14 = arith.constant dense<0.000000e+00> : vector<8xf32>
    %23 = vector.multi_reduction <add>, %22, %cst_14 [1] : vector<8x128xf32> to vector<8xf32>
    %24 = vector.shape_cast %23 : vector<8xf32> to vector<8x1xf32>
    %c0_15 = arith.constant 0 : index
    %c0_16 = arith.constant 0 : index
    %25 = vector.load %arg8[%c0_15, %c0_16] : memref<1x1xf32, #tpu.memory_space<vmem>>, vector<1x1xf32>
    %26 = vector.broadcast %25 : vector<1x1xf32> to vector<8x1xf32>
    %27 = arith.addf %24, %26 : vector<8x1xf32>
    %cst_17 = arith.constant 0.000000e+00 : f32
    %28 = vector.broadcast %cst_17 : f32 to vector<8x1xf32>
    %29 = arith.maximumf %27, %28 : vector<8x1xf32>
    %30 = vector.shape_cast %29 : vector<8x1xf32> to vector<1x8x1xf32>
    %31 = vector.broadcast %30 : vector<1x8x1xf32> to vector<1x8x128xf32>
    %32 = arith.mulf %31, %19 : vector<1x8x128xf32>
    %cst_18 = arith.constant dense<0.000000e+00> : vector<1x128xf32>
    %33 = vector.multi_reduction <add>, %32, %cst_18 [1] : vector<1x8x128xf32> to vector<1x128xf32>
    %34 = arith.truncf %33 : vector<1x128xf32> to vector<1x128xbf16>
    %c0_19 = arith.constant 0 : index
    %c0_20 = arith.constant 0 : index
    %35 = vector.load %arg5[%c0_19, %c0_20] : memref<128x128xbf16, #tpu.memory_space<vmem>>, vector<128x128xbf16>
    %cst_21 = arith.constant dense<0.000000e+00> : vector<1x128xf32>
    %36 = tpu.matmul %34, %35, %cst_21 {dimension_numbers = #tpu.dot_dimension_numbers<[1], [0], [0], [1], [0, 0, 1, 1], [], []>} : vector<1x128xbf16>, vector<128x128xbf16>, vector<1x128xf32> -> vector<1x128xf32>
    %c1 = arith.constant 1 : index
    %c0_22 = arith.constant 0 : index
    %37 = vector.load %arg7[%c1, %c0_22] : memref<8x128xf32, #tpu.memory_space<vmem>>, vector<1x128xf32>
    %38 = arith.addf %36, %37 : vector<1x128xf32>
    %cst_23 = arith.constant 0.000000e+00 : f32
    %39 = vector.broadcast %cst_23 : f32 to vector<1x128xf32>
    %40 = arith.maximumf %38, %39 : vector<1x128xf32>
    %41 = arith.truncf %40 : vector<1x128xf32> to vector<1x128xbf16>
    %c0_24 = arith.constant 0 : index
    %c0_25 = arith.constant 0 : index
    %42 = vector.load %arg6[%c0_24, %c0_25] : memref<128x128xbf16, #tpu.memory_space<vmem>>, vector<128x128xbf16>
    %cst_26 = arith.constant dense<0.000000e+00> : vector<1x128xf32>
    %43 = tpu.matmul %41, %42, %cst_26 {dimension_numbers = #tpu.dot_dimension_numbers<[1], [0], [0], [1], [0, 0, 1, 1], [], []>} : vector<1x128xbf16>, vector<128x128xbf16>, vector<1x128xf32> -> vector<1x128xf32>
    %c2 = arith.constant 2 : index
    %c0_27 = arith.constant 0 : index
    %44 = vector.load %arg7[%c2, %c0_27] : memref<8x128xf32, #tpu.memory_space<vmem>>, vector<1x128xf32>
    %45 = arith.addf %43, %44 : vector<1x128xf32>
    %cst_28 = arith.constant 0.000000e+00 : f32
    %46 = vector.broadcast %cst_28 : f32 to vector<1x128xf32>
    %47 = arith.maximumf %45, %46 : vector<1x128xf32>
    %48 = vector.shape_cast %47 : vector<1x128xf32> to vector<1x1x128xf32>
    %49 = vector.broadcast %48 : vector<1x1x128xf32> to vector<1x8x128xf32>
    %50 = arith.mulf %19, %49 : vector<1x8x128xf32>
    %cst_29 = arith.constant dense<0.000000e+00> : vector<1x8xf32>
    %51 = vector.multi_reduction <add>, %50, %cst_29 [2] : vector<1x8x128xf32> to vector<1x8xf32>
    %52 = vector.shape_cast %51 : vector<1x8xf32> to vector<1x8x1xf32>
    %53 = vector.broadcast %52 : vector<1x8x1xf32> to vector<1x8x128xf32>
    %54 = arith.mulf %53, %19 : vector<1x8x128xf32>
    %55 = vector.shape_cast %47 : vector<1x128xf32> to vector<1x1x128xf32>
    %c0_30 = arith.constant 0 : index
    %c0_31 = arith.constant 0 : index
    %c0_32 = arith.constant 0 : index
    %56 = vector.load %arg9[%c0_30, %c0_31, %c0_32] : memref<1x1x128xf32, #tpu.memory_space<vmem>>, vector<1x1x128xf32>
    tpu.vector_store %arg9[%c0_30, %c0_31, %c0_32], %55 {strides = array<i32>} : memref<1x1x128xf32, #tpu.memory_space<vmem>>, vector<1x1x128xf32>,
    %c0_33 = arith.constant 0 : index
    %c0_34 = arith.constant 0 : index
    %c0_35 = arith.constant 0 : index
    %57 = vector.load %arg10[%c0_33, %c0_34, %c0_35] : memref<1x8x128xf32, #tpu.memory_space<vmem>>, vector<1x8x128xf32>
    tpu.vector_store %arg10[%c0_33, %c0_34, %c0_35], %54 {strides = array<i32>} : memref<1x8x128xf32, #tpu.memory_space<vmem>>, vector<1x8x128xf32>,
    return
  }
  func.func @transform_0(%arg0: i32) -> (i32, i32, i32) {
    %c0_i32 = arith.constant 0 : i32
    %c0_i32_0 = arith.constant 0 : i32
    %c0_i32_1 = arith.constant 0 : i32
    return %arg0, %c0_i32, %c0_i32_0 : i32, i32, i32
  }
  func.func @transform_1(%arg0: i32) -> (i32, i32) {
    %c0_i32 = arith.constant 0 : i32
    %c0_i32_0 = arith.constant 0 : i32
    %c0_i32_1 = arith.constant 0 : i32
    return %c0_i32, %c0_i32_0 : i32, i32
  }
  func.func @transform_2(%arg0: i32) -> (i32, i32) {
    %c0_i32 = arith.constant 0 : i32
    %c0_i32_0 = arith.constant 0 : i32
    %c0_i32_1 = arith.constant 0 : i32
    return %c0_i32, %c0_i32_0 : i32, i32
  }
  func.func @transform_3(%arg0: i32) -> (i32, i32) {
    %c0_i32 = arith.constant 0 : i32
    %c0_i32_0 = arith.constant 0 : i32
    %c0_i32_1 = arith.constant 0 : i32
    return %c0_i32, %c0_i32_0 : i32, i32
  }
  func.func @transform_4(%arg0: i32) -> (i32, i32) {
    %c0_i32 = arith.constant 0 : i32
    %c0_i32_0 = arith.constant 0 : i32
    %c0_i32_1 = arith.constant 0 : i32
    return %c0_i32, %c0_i32_0 : i32, i32
  }
  func.func @transform_5(%arg0: i32) -> (i32, i32) {
    %c0_i32 = arith.constant 0 : i32
    %c0_i32_0 = arith.constant 0 : i32
    %c0_i32_1 = arith.constant 0 : i32
    return %c0_i32, %c0_i32_0 : i32, i32
  }
  func.func @transform_6(%arg0: i32) -> (i32, i32) {
    %c0_i32 = arith.constant 0 : i32
    %c0_i32_0 = arith.constant 0 : i32
    %c0_i32_1 = arith.constant 0 : i32
    return %c0_i32, %c0_i32_0 : i32, i32
  }
  func.func @transform_7(%arg0: i32) -> (i32, i32) {
    %c0_i32 = arith.constant 0 : i32
    %c0_i32_0 = arith.constant 0 : i32
    %c0_i32_1 = arith.constant 0 : i32
    return %c0_i32, %c0_i32_0 : i32, i32
  }
  func.func @transform_8(%arg0: i32) -> (i32, i32, i32) {
    %c0_i32 = arith.constant 0 : i32
    %c0_i32_0 = arith.constant 0 : i32
    %c0_i32_1 = arith.constant 0 : i32
    return %arg0, %c0_i32, %c0_i32_0 : i32, i32, i32
  }
  func.func @transform_9(%arg0: i32) -> (i32, i32, i32) {
    %c0_i32 = arith.constant 0 : i32
    %c0_i32_0 = arith.constant 0 : i32
    %c0_i32_1 = arith.constant 0 : i32
    return %arg0, %c0_i32, %c0_i32_0 : i32, i32, i32
  }
}

</mosaic_0001>

<bundles_post_ra>
// kernel: tpu_custom_call.1
= control target key start
LH: loop header
LB: loop body
LE: loop exit
PB: predicated region body
PF: predicated region fallthrough
CT: control target
= control target key end

     0   :  { %s1910_s0 = inlined_call_operand.hbm [shape: bf16[2,8,128], index: 0, kind: input, shape index: {}]   ;;  %s1911_s1 = inlined_call_operand.hbm [shape: bf16[128,256], index: 1, kind: input, shape index: {}]   ;;  %s1912_s2 = inlined_call_operand.vmem [shape: f32[1,256], index: 2, kind: input, shape index: {}]   ;;  %s1913_s3 = inlined_call_operand.hbm [shape: bf16[128,128], index: 3, kind: input, shape index: {}]   ;;  %s1914_s4 = inlined_call_operand.hbm [shape: bf16[128,128], index: 4, kind: input, shape index: {}]   ;;  %s1915_s5 = inlined_call_operand.hbm [shape: bf16[128,128], index: 5, kind: input, shape index: {}]   ;;  %s1916_s6 = inlined_call_operand.hbm [shape: f32[8,128], index: 6, kind: input, shape index: {}]   ;;  %s1917_s7 = inlined_call_operand.<no memory space> [shape: f32[1,1], index: 7, kind: input, shape index: {}]   ;;  %s1918_s8 = inlined_call_operand.hbm [shape: f32[2,1,128], index: 8, kind: output, shape index: {0}]   ;;  %s1919_s9 = inlined_call_operand.hbm [shape: f32[2,8,128], index: 9, kind: output, shape index: {1}]  }
   0x1   :  { %1920 = sst [smem:[#allocation23_spill]] %s1911_s1  ;;  %v15_v0 = vstv %s1917_s7 }
   0x2   :  { %1921 = sst [smem:[#allocation24_spill]] %s1913_s3  ;;  %16 = vst [vmem:[#allocation2] sm:$0x1] %v15_v0 }
   0x3   :  { %17 = vsyncpa [#allocation4], 0 }
   0x4   :  { %19 = vsyncpa [#allocation4 + $0x1], 0 }
   0x5   :  { %20 = vsyncpa [#allocation7], 0 }
   0x6   :  { %21 = vsyncpa [#allocation10], 0 }
   0x7   :  { %22 = vsyncpa [#allocation13], 0 }
   0x8   :  { %23 = vsyncpa [#allocation5], 0 }
   0x9   :  { %25 = vsyncpa [#allocation5 + $0x1], 0 }
   0xa   :  { %26 = vsyncpa [#allocation16], 0 }
   0xb   :  { %28 = vsyncpa [#allocation16 + $0x1], 0  ;;  %s1712_s11 = smov 0   ;;  %s1714_s12 = smov 0  }
   0xc   :  { %s1716_s13 = smov 0   ;;  %s1718_s14 = smov 0  }
   0xd LB: > { %s1922_s1 = sld [smem:[#allocation23_spill]]  ;;  %s1736_s17 = sadd.s32 4294967295, %s1647_s14   ;;  %s1647_s14 = sphi %s1718_s14, %s1934_s14   ;;  %s1643_s13 = sphi %s1716_s13, %s1933_s13   ;;  %s1639_s12 = sphi %s1714_s12, %s1932_s12   ;;  %s1635_s11 = sphi %s1712_s11, %s1931_s11  }
   0xe   : > { %p1025_p0 = scmp.ge.s32.totalorder %s1647_s14, 1  ;;  %p55_p1 = scmp.eq.s32.totalorder %s1736_s17, 0 }
   0xf   : > { %p264_p2 = scmp.lt.s32.totalorder %s1647_s14, 3  ;;  %s1649_s19 = smov [#allocation6]  }
  0x10   : > { %s277_s20 = sshll.u32 %s1649_s19, 4  ;;  %s306_s24 = sshll.u32 %s1914_s4, 4  ;;  %s278_s20 = int_to_ptr.vmem [resolvable:$true] %s277_s20  ;;  %s307_s24 = int_to_ptr.hbm [resolvable:$true] %s306_s24 }
  0x11   : > { %p1741_p3 = pnand %p1025_p0, %p264_p2  ;;  %s1650_s25 = smov 128  }
  0x12   : > { %s1651_s26 = smov 8   ;;  %s1652_s27 = smov [#allocation9]  }
  0x13   : > { %s275_s16 = sshll.u32 %s1922_s1, 4  ;;  %p1272_p4 = pneg %p1741_p3  ;;  %s276_s16 = int_to_ptr.hbm [resolvable:$true] %s275_s16 }
  0x14   : > { %s308_s28 = sshll.u32 %s1652_s27, 4  ;;  %s1925_s3 = sld [smem:[#allocation24_spill]]  ;;  %s309_s28 = int_to_ptr.vmem [resolvable:$true] %s308_s28 }
  0x15   : > { %p1750_p6 = pnand %p1272_p4, %p55_p1  ;;  %s1653_s7 = smov 64  }
  0x16   : > { %s1654_s15 = smov 4   ;;  %s320_s23 = sshll.u32 %s1915_s5, 4  ;;  %s321_s23 = int_to_ptr.hbm [resolvable:$true] %s320_s23 }
  0x17   : > { %1275 = dma.hbm_to_vmem [thread:$0]  (!%p1750_p6), %s276_s16, 2048, %s278_s20, [#allocation7], %s1650_s25, %s1650_s25, %s1651_s26  }
  0x18   : > { %1281 = dma.hbm_to_vmem [thread:$0]  (!%p1750_p6), %s307_s24, 1024, %s309_s28, [#allocation10], %s1653_s7, %s1653_s7, %s1654_s15  }
  0x19   : > { %s1655_s16 = smov [#allocation8]   ;;  %s1656_s25 = smov [#allocation11]  }
  0x1a   : > { %s292_s10 = sshll.u32 %s1925_s3, 4  ;;  %s294_s20 = sshll.u32 %s1655_s16, 4  ;;  %s293_s10 = int_to_ptr.hbm [resolvable:$true] %s292_s10  ;;  %s295_s20 = int_to_ptr.vmem [resolvable:$true] %s294_s20 }
  0x1b   : > { %1278 = dma.hbm_to_vmem [thread:$0]  (!%p1750_p6), %s293_s10, 1024, %s295_s20, [#allocation7], %s1653_s7, %s1653_s7, %s1654_s15  }
  0x1c   : > { %s322_s24 = sshll.u32 %s1656_s25, 4  ;;  %s335_s28 = sshll.u32 %s1916_s6, 4  ;;  %s323_s24 = int_to_ptr.vmem [resolvable:$true] %s322_s24  ;;  %s336_s28 = int_to_ptr.hbm [resolvable:$true] %s335_s28 }
  0x1d   : > { %1284 = dma.hbm_to_vmem [thread:$0]  (!%p1750_p6), %s321_s23, 1024, %s323_s24, [#allocation10], %s1653_s7, %s1653_s7, %s1654_s15  }
  0x1e   : > { %s1657_s29 = smov [#allocation12]   ;;  %s1024_s10 = sadd.s32 4294967294, %s1647_s14  }
  0x1f   : > { %s337_s30 = sshll.u32 %s1657_s29, 4  ;;  %s1778_s19 = sadd.s32 1, %s1647_s14   ;;  %s338_s30 = int_to_ptr.vmem [resolvable:$true] %s337_s30 }
  0x20   : > { %1287 = dma.hbm_to_vmem [thread:$0]  (!%p1750_p6), %s336_s28, 128, %s338_s30, [#allocation13]  }
  0x21   : > { %s41_s22 = sadd.s32 1, %s1643_s13  ;;  %s38_s16 = ssub.s32 %s1647_s14, %s1778_s19 }
  0x22   : > { %p48_p7 = scmp.ne.s32.totalorder %s1643_s13, %s1639_s12  ;;  %p39_p8 = scmp.eq.s32.totalorder %s38_s16, 0 }
  0x23   : > { %p49_p9 = scmp.eq.s32.totalorder %s1647_s14, 0  ;;  %p54_p10 = scmp.ne.s32.totalorder %s1639_s12, %s1635_s11 }
  0x24   : > { %p225_p11 = scmp.eq.s32.totalorder %s1736_s17, 1  ;;  %p231_p0 = scmp.eq.s32.totalorder %s1024_s10, 1 }
  0x25   : > { %s1790_s7 = scalar_select %p39_p8, %s1643_s13, %s41_s22  }
  0x26   : > { %p1794_p12 = por %p55_p1, %p54_p10  ;;  %p1798_p13 = por %p225_p11, %p48_p7 }
  0x27   : > { %p50_p2 = por %p49_p9, %p48_p7  ;;  %s351_s23 = sand.u32 1, %s1643_s13  }
  0x28   : > { %p1803_p4 = por %p231_p0, %p54_p10  ;;  %p1304_p6 = scmp.lt.s32.totalorder %s1647_s14, 2 }
  0x29   : > { %s1032_s25 = sshll.u32 %s351_s23, 2  ;;  %s1033_s24 = sshll.u32 %s1647_s14, 2 }
  0x2a   : > { %s359_s28 = scalar_lea.hbm %s1910_s0, %s1033_s24  ;;  %s355_s30 = scalar_lea.vmem [#allocation3], %s1032_s25 }
  0x2b   : > { %s361_s29 = sshll.u32 %s359_s28, 4  ;;  %s363_s22 = sshll.u32 %s355_s30, 4  ;;  %s362_s29 = int_to_ptr.hbm [resolvable:$true] %s361_s29  ;;  %s364_s22 = int_to_ptr.vmem [resolvable:$true] %s363_s22 }
  0x2c   : > { %p1812_p8 = pnand %p1304_p6, %p50_p2  ;;  %s352_s16 = scalar_lea.sflag [#allocation4], %s351_s23 }
  0x2d   : > { %s1507_s1 = sshra.s32 %s362_s29, 4  ;;  %s1514_s25 = scalar_lea.hbm %s1910_s0, 8  ;;  %s1508_s1 = int_to_ptr.hbm [resolvable:$true] %s1507_s1 }
  0x2e   : > { %s1509_s3 = scalar_lea.hbm %s1508_s1, 4  ;;  %p1511_p9 = pneg %p1812_p8 }
  0x2f   : > { %p1510_p7 = scmp.ne.s32.totalorder %s1508_s1, %s1509_s3  ;;  %p1515_p0 = scmp.lt.s32.totalorder %s1508_s1, %s1910_s0 }
  0x30   : > { %p1516_p2 = scmp.lt.s32.totalorder %s1514_s25, %s1509_s3 }
  0x31   : > { %p1512_p10 = pnand %p1511_p9, %p1510_p7 }
  0x32   : > { %p1517_p6 = por %p1516_p2, %p1515_p0 }
  0x33   : > { %p1513_p11 = pneg %p1512_p10 }
  0x35   : > { %p1518_p5 = pnand %p1517_p6, %p1513_p11 }
  0x37   : > { %1521 = shalt.err (!%p1518_p5)
}
  0x38   : > { %1291 = dma.hbm_to_vmem [thread:$0]  (!%p1812_p8), %s362_s29, 64, %s364_s22, %s352_s16  }
  0x39   : > { %372 = sbr.rel (%p1741_p3) target bundleno = 879 (0x36f), region = 52  ;;  %s1829_s23 = sand.u32 (!%p1741_p3), 1, %s1639_s12  }
  0x3a   : > { %s1035_s30 = sshll.u32 (!%p1741_p3), %s1829_s23, 2  ;;  %s375_s24 = scalar_lea.sflag (!%p1741_p3), [#allocation4], %s1829_s23 }
  0x3b   : > { %s1833_s26 = scalar_lea.vmem (!%p1741_p3), [#allocation3], %s1035_s30 }
  0x3e   : > { %1610 = dma.done.wait (%p1794_p12), %s375_s24, 64  }
  0x3f   : > { %1612 = vsyncadd (%p1794_p12), %s375_s24, 4294967232 }
  0x40   : > { %1614 = dma.done.wait (%p55_p1), [#allocation7], 3072  }
  0x41   : > { %1616 = vsyncadd (%p55_p1), [#allocation7], 4294964224 }
  0x42   : > { %1618 = dma.done.wait (%p55_p1), [#allocation10], 2048  }
  0x43   : > { %1620 = vsyncadd (%p55_p1), [#allocation10], 4294965248 }
  0x44   : > { %1622 = dma.done.wait (%p55_p1), [#allocation13], 128  }
  0x45   : > { %1624 = vsyncadd (%p55_p1), [#allocation13], 4294967168  ;;  %v1220_v1 = vld [vmem:[#allocation6 + $0x74] sm:$0xf]  ;;  %v1102_v2 = vld [vmem:[#allocation6 + $0x78] sm:$0xf0]  ;;  %s859_s29 = scalar_lea.hbm %s1918_s8, %s1736_s17 }
  0x46   : > { %v1218_v3 = vld [vmem:[#allocation6 + $0x64] sm:$0xf]  ;;  %v1105_v4 = vor.u32 %v1220_v1, %v1102_v2  ;;  %v1094_v5 = vld [vmem:[#allocation6 + $0x68] sm:$0xf0]  ;;  %v1216_v7 = vld [vmem:[#allocation6 + $0x54] sm:$0xf] }
  0x47   : > { %v1097_v6 = vor.u32 %v1218_v3, %v1094_v5  ;;  %v1086_v8 = vld [vmem:[#allocation6 + $0x58] sm:$0xf0]  ;;  %v1100_v9 = vld [vmem:[#allocation6 + $0x70] sm:$0xf]  ;;  %v1221_v10 = vld [vmem:[#allocation6 + $0x74] sm:$0xf0] }
  0x48   : > { %559 = vmatpush.bf16.msra.mxu1 %v1105_v4  ;;  %v1092_v11 = vld [vmem:[#allocation6 + $0x60] sm:$0xf]  ;;  %v1219_v12 = vld [vmem:[#allocation6 + $0x64] sm:$0xf0]  ;;  %v1089_v13 = vor.u32 %v1216_v7, %v1086_v8  ;;  %v1101_v14 = vor.u32 %v1221_v10, %v1100_v9  ;;  %v1214_v15 = vld [vmem:[#allocation6 + $0x44] sm:$0xf] }
  0x49   : > { %v1078_v16 = vld [vmem:[#allocation6 + $0x48] sm:$0xf0]  ;;  %v1093_v17 = vor.u32 %v1219_v12, %v1092_v11  ;;  %v1084_v18 = vld [vmem:[#allocation6 + $0x50] sm:$0xf]  ;;  %v1217_v19 = vld [vmem:[#allocation6 + $0x54] sm:$0xf0] }
  0x4a   : > { %546 = vmatpush.bf16.msra.mxu0 %v1101_v14  ;;  %v1081_v20 = vor.u32 %v1214_v15, %v1078_v16  ;;  %v1212_v21 = vld [vmem:[#allocation6 + $0x34] sm:$0xf]  ;;  %v1070_v22 = vld [vmem:[#allocation6 + $0x38] sm:$0xf0]  ;;  %v1085_v23 = vor.u32 %v1217_v19, %v1084_v18  ;;  %v1076_v24 = vld [vmem:[#allocation6 + $0x40] sm:$0xf] }
  0x4b   : > { %v1215_v25 = vld [vmem:[#allocation6 + $0x44] sm:$0xf0]  ;;  %v1073_v26 = vor.u32 %v1212_v21, %v1070_v22  ;;  %v1210_v27 = vld [vmem:[#allocation6 + $0x24] sm:$0xf]  ;;  %v1062_v28 = vld [vmem:[#allocation6 + $0x28] sm:$0xf0] }
  0x4c   : > { %560 = vmatpush.bf16.msra.mxu1 %v1097_v6  ;;  %v1077_v29 = vor.u32 %v1215_v25, %v1076_v24  ;;  %v1068_v30 = vld [vmem:[#allocation6 + $0x30] sm:$0xf]  ;;  %v1213_v31 = vld [vmem:[#allocation6 + $0x34] sm:$0xf0]  ;;  %v1065_v32 = vor.u32 %v1210_v27, %v1062_v28  ;;  %v1208_v33 = vld [vmem:[#allocation6 + $0x14] sm:$0xf] }
  0x4d   : > { %v1054_v34 = vld [vmem:[#allocation6 + $0x18] sm:$0xf0]  ;;  %v1069_v35 = vor.u32 %v1213_v31, %v1068_v30  ;;  %v1060_v36 = vld [vmem:[#allocation6 + $0x20] sm:$0xf]  ;;  %v1211_v37 = vld [vmem:[#allocation6 + $0x24] sm:$0xf0] }
  0x4e   : > { %547 = vmatpush.bf16.msra.mxu0 %v1093_v17  ;;  %v1057_v38 = vor.u32 %v1208_v33, %v1054_v34  ;;  %v1206_v39 = vld [vmem:[#allocation6 + $0x4] sm:$0xf]  ;;  %v1046_v40 = vld [vmem:[#allocation6 + $0x8] sm:$0xf0]  ;;  %v1061_v41 = vor.u32 %v1211_v37, %v1060_v36  ;;  %v1052_v42 = vld [vmem:[#allocation6 + $0x10] sm:$0xf] }
  0x4f   : > { %v1209_v43 = vld [vmem:[#allocation6 + $0x14] sm:$0xf0]  ;;  %v1049_v44 = vor.u32 %v1206_v39, %v1046_v40  ;;  %v1044_v46 = vld [vmem:[#allocation6] sm:$0xf]  ;;  %v1207_v47 = vld [vmem:[#allocation6 + $0x4] sm:$0xf0] }
  0x50   : > { %561 = vmatpush.bf16.msra.mxu1 %v1089_v13  ;;  %v1053_v45 = vor.u32 %v1209_v43, %v1052_v42  ;;  %v443_v48 = vld [vmem:[%s1833_s26] sm:$0xf]  ;;  %v1045_v49 = vor.u32 %v1207_v47, %v1044_v46  ;;  %v1228_v51 = vld [vmem:[#allocation8 + $0x30] sm:$0xff]  ;;  %v1227_v52 = vld [vmem:[#allocation8 + $0x28] sm:$0xff]  ;;  %v1658_v8 = vmov 0   ;;  %s435_s22 = scalar_lea.vmem [#allocation14], %s1829_s23 }
  0x51   : > { %v1229_v50 = vld [vmem:[#allocation8 + $0x38] sm:$0xff]  ;;  %v1226_v53 = vld [vmem:[#allocation8 + $0x20] sm:$0xff]  ;;  %v1224_v56 = vld [vmem:[#allocation8 + $0x10] sm:$0xff]  ;;  %1353 = vset.pattern.permute.xlu0 %v1658_v8  ;;  %s861_s10 = sshll.u32 %s435_s22, 4  ;;  %s863_s16 = sshll.u32 %s859_s29, 4  ;;  %s862_s10 = int_to_ptr.vmem [resolvable:$true] %s861_s10  ;;  %s864_s16 = int_to_ptr.hbm [resolvable:$true] %s863_s16 }
  0x52   : > { %548 = vmatpush.bf16.msra.mxu0 %v1085_v23  ;;  %641 = vmatpush.bf16.msra.mxu2 %v1229_v50  ;;  %v1225_v54 = vld [vmem:[#allocation8 + $0x18] sm:$0xff]  ;;  %v1223_v58 = vld [vmem:[#allocation8 + $0x8] sm:$0xff]  ;;  %v1354_v61 = vld [vmem:[#allocation12 + $0x3] ss:$0 sm:$0xff]  ;;  %s846_s25 = scalar_lea.sflag [#allocation5], %s1829_s23  ;;  %s1551_s27 = sshra.s32 %s864_s16, 4  ;;  %s1552_s27 = int_to_ptr.hbm [resolvable:$true] %s1551_s27 }
  0x53   : > { %v460_v55 = vld [vmem:[%s1912_s2] sm:$0x3]  ;;  %v1222_v62 = vld [vmem:[#allocation8] sm:$0xff]  ;;  %v1235_v11 = vld [vmem:[#allocation9 + $0x28] sm:$0xff]  ;;  %s1553_s28 = scalar_lea.hbm %s1552_s27, 1  ;;  %s1557_s26 = scalar_lea.hbm %s1918_s8, 2 }
  0x54   : > { %562 = vmatpush.bf16.msra.mxu1 %v1081_v20  ;;  %v463_v57 = vperm.slane %v460_v55, 1  ;;  %v462_v0 = vperm.slane %v460_v55, 0  ;;  %v1237_v9 = vld [vmem:[#allocation9 + $0x38] sm:$0xff]  ;;  %v1236_v10 = vld [vmem:[#allocation9 + $0x30] sm:$0xff]  ;;  %v1234_v13 = vld [vmem:[#allocation9 + $0x20] sm:$0xff]  ;;  %p1554_p1 = scmp.ne.s32.totalorder %s1552_s27, %s1553_s28  ;;  %p1558_p12 = scmp.lt.s32.totalorder %s1552_s27, %s1918_s8 }
  0x55   : > { %744 = vmatpush.bf16.msra.mxu3 %v1237_v9  ;;  %v1355_v12 = vld [vmem:[#allocation2] ss:$0 sm:$0xff]  ;;  %v1233_v19 = vld [vmem:[#allocation9 + $0x18] sm:$0xff]  ;;  %v1231_v21 = vld [vmem:[#allocation9 + $0x8] sm:$0xff]  ;;  %p1559_p8 = scmp.lt.s32.totalorder %s1557_s26, %s1553_s28 }
  0x56   : > { %549 = vmatpush.bf16.msra.mxu0 %v1077_v29  ;;  %642 = vmatpush.bf16.msra.mxu2 %v1228_v51  ;;  %v1232_v20 = vld [vmem:[#allocation9 + $0x10] sm:$0xff]  ;;  %v1230_v22 = vld [vmem:[#allocation9] sm:$0xff]  ;;  %v1245_v23 = vld [vmem:[#allocation11 + $0x38] sm:$0xff]  ;;  %p1555_p3 = pnand %p1554_p1, %p1798_p13 }
  0x57   : > { %v1244_v24 = vld [vmem:[#allocation11 + $0x30] sm:$0xff]  ;;  %v1356_v25 = vld [vmem:[#allocation12] ss:$0 sm:$0xff]  ;;  %v1241_v30 = vld [vmem:[#allocation11 + $0x18] sm:$0xff]  ;;  %p1560_p7 = por %p1559_p8, %p1558_p12 }
  0x58   : > { %563 = vmatpush.bf16.msra.mxu1 %v1073_v26  ;;  %v1243_v26 = vld [vmem:[#allocation11 + $0x28] sm:$0xff]  ;;  %v1242_v28 = vld [vmem:[#allocation11 + $0x20] sm:$0xff]  ;;  %v1240_v34 = vld [vmem:[#allocation11 + $0x10] sm:$0xff]  ;;  %p1556_p5 = pneg %p1555_p3 }
  0x59   : > { %745 = vmatpush.bf16.msra.mxu3 %v1236_v10  ;;  %v1238_v42 = vld [vmem:[#allocation11] sm:$0xff] }
  0x5a   : > { %550 = vmatpush.bf16.msra.mxu0 %v1069_v35  ;;  %643 = vmatpush.bf16.msra.mxu2 %v1227_v52  ;;  %v695_v43 = vld [vmem:[#allocation12 + $0x1] sm:$0x1]  ;;  %p1561_p9 = pnand %p1560_p7, %p1556_p5 }
  0x5c   : > { %564 = vmatpush.bf16.msra.mxu1 %v1065_v32 }
  0x5d   : > { %746 = vmatpush.bf16.msra.mxu3 %v1235_v11 }
  0x5e   : > { %551 = vmatpush.bf16.msra.mxu0 %v1061_v41  ;;  %644 = vmatpush.bf16.msra.mxu2 %v1226_v53  ;;  %v1239_v41 = vld [vmem:[#allocation11 + $0x8] sm:$0xff] }
  0x60   : > { %565 = vmatpush.bf16.msra.mxu1 %v1057_v38 }
  0x61   : > { %747 = vmatpush.bf16.msra.mxu3 %v1234_v13 }
  0x62   : > { %552 = vmatpush.bf16.msra.mxu0 %v1053_v45  ;;  %645 = vmatpush.bf16.msra.mxu2 %v1225_v54 }
  0x64   : > { %566 = vmatpush.bf16.msra.mxu1 %v1049_v44 }
  0x65   : > { %748 = vmatpush.bf16.msra.mxu3 %v1233_v19 }
  0x66   : > { %553 = vmatpush.bf16.msra.mxu0 %v1045_v49  ;;  %646 = vmatpush.bf16.msra.mxu2 %v1224_v56  ;;  %v775_v49 = vld [vmem:[#allocation12 + $0x2] sm:$0x1] }
  0x67   : > { %567 = vmatmul.bf16.vlgmr.msra.gmra.mxu1 %v443_v48 }
  0x69   : > { %554 = vmatmul.bf16.vlgmr.msra.gmra.mxu0 %v443_v48  ;;  %749 = vmatpush.bf16.msra.mxu3 %v1232_v20 }
  0x6a   : > { %647 = vmatpush.bf16.msra.mxu2 %v1223_v58  ;;  %824 = vmatpush.bf16.msrb.mxu0 %v1245_v23 }
  0x6d   : > { %750 = vmatpush.bf16.msra.mxu3 %v1231_v21 }
  0x6e   : > { %648 = vmatpush.bf16.msra.mxu2 %v1222_v62  ;;  %825 = vmatpush.bf16.msrb.mxu0 %v1244_v24 }
  0x71   : > { %751 = vmatpush.bf16.msra.mxu3 %v1230_v22 }
  0x72   : > { %826 = vmatpush.bf16.msrb.mxu0 %v1243_v26 }
  0x76   : > { %827 = vmatpush.bf16.msrb.mxu0 %v1242_v28 }
  0x7a   : > { %828 = vmatpush.bf16.msrb.mxu0 %v1241_v30 }
  0x7e   : > { %829 = vmatpush.bf16.msrb.mxu0 %v1240_v34 }
  0x82   : > { %830 = vmatpush.bf16.msrb.mxu0 %v1239_v41 }
  0x86   : > { %831 = vmatpush.bf16.msrb.mxu0 %v1238_v42 }
  0xe4   : > { %v568_v59 = vpop.f32.mrf.mxu1 }
  0xe5   : > { %v569_v60 = vadd.f32 %v568_v59, %v463_v57 }
  0xe6   : > { %v555_v2 = vpop.f32.mrf.mxu0 }
  0xe7   : > { %v573_v63 = vmax.f32 %v569_v60, 0.0  ;;  %v556_v3 = vadd.f32 %v555_v2, %v462_v0 }
  0xe9   : > { %v657_v1 = vmul.f32 %v1354_v61, %v573_v63  ;;  %v572_v5 = vmax.f32 %v556_v3, 0.0 }
  0xeb   : > { %658 = vadd.xlane.f32.xlu0 %v657_v1  ;;  %v574_v6 = vpack.c.bf16 %v572_v5, %v572_v5 }
  0xec   : > { %v570_v4 = vpop.f32.mrf.mxu1 }
  0xed   : > { %649 = vmatmul.bf16.vlgmr.msra.gmra.mxu2 %v574_v6 }
  0xee   : > { %v557_v7 = vpop.f32.mrf.mxu0 }
 0x15e   : > { %v659_v14 = vpop.xlane.xlu0 %658 }
 0x15f   : > { %v664_v15 = vadd.f32 %v1355_v12, %v659_v14 }
 0x161   : > { %v665_v16 = vmax.f32 %v664_v15, 0.0 }
 0x163   : > { %668 = vperm.xlu0 %1353, %v665_v16  }
 0x170   : > { %v650_v17 = vpop.f32.mrf.mxu2 }
 0x171   : > { %v651_v27 = vadd.f32 %v1356_v25, %v650_v17 }
 0x173   : > { %v1855_v29 = vmax.f32 %v651_v27, 0.0 }
 0x178   : > { %v652_v18 = vpop.f32.mrf.mxu2 }
 0x1d5   : > { %v669_v31 = vpop.permute.xlu0 %668 }
 0x1d6   : > { %v671_v32 = vmul.f32 %v669_v31, %v1855_v29 }
 0x1d8   : > { %v672_v33 = vrot.slane %v671_v32, 4 }
 0x1da   : > { %v673_v35 = vadd.f32 %v672_v33, %v671_v32 }
 0x1dc   : > { %v674_v36 = vrot.slane %v673_v35, 2 }
 0x1de   : > { %v675_v37 = vadd.f32 %v674_v36, %v673_v35 }
 0x1e0   : > { %v676_v38 = vrot.slane %v675_v37, 1 }
 0x1e2   : > { %v677_v39 = vadd.f32 %v676_v38, %v675_v37 }
 0x1e4   : > { %v678_v40 = vpack.c.bf16 %v677_v39, %v677_v39 }
 0x1e6   : > { %752 = vmatmul.bf16.vlgmr.msra.gmra.mxu3 %v678_v40 }
 0x269   : > { %v753_v44 = vpop.f32.mrf.mxu3 }
 0x26a   : > { %v754_v45 = vadd.f32 %v753_v44, %v695_v43 }
 0x26c   : > { %v757_v46 = vmax.f32 %v754_v45, 0.0 }
 0x26e   : > { %v758_v47 = vpack.c.bf16 %v757_v46, %v757_v46 }
 0x270   : > { %832 = vmatmul.bf16.vlgmr.msrb.gmra.mxu0 %v758_v47 }
 0x271   : > { %v755_v48 = vpop.f32.mrf.mxu3 }
 0x2ed   : > { %v833_v50 = vpop.f32.mrf.mxu0 }
 0x2ee   : > { %v834_v51 = vadd.f32 %v833_v50, %v775_v49 }
 0x2f0   : > { %v837_v52 = vmax.f32 %v834_v51, 0.0 }
 0x2f2   : > { %843 = vst [vmem:[%s435_s22] sm:$0x1] %v837_v52  ;;  %v838_v53 = vperm.slane %v837_v52, 0 }
 0x2f3   : > { %1564 = shalt.err (!%p1561_p9)
}
 0x2f4   : > { %1268 = dma.vmem_to_hbm [thread:$0]  (%p1798_p13), %s862_s10, 16, %s864_s16, %s846_s25   ;;  %v839_v54 = vmul.f32 %v838_v53, %v1855_v29 }
 0x2f5   : > { %v835_v55 = vpop.f32.mrf.mxu0  ;;  %s1041_s18 = sshll.u32 %s1829_s23, 3  ;;  %s1203_s21 = sshll.u32 %s1736_s17, 3 }
 0x2f6   : > { %840 = vadd.xlane.f32.xlu1 %v839_v54  ;;  %s873_s27 = scalar_lea.hbm %s1919_s9, %s1203_s21  ;;  %s442_s28 = scalar_lea.vmem [#allocation15], %s1041_s18 }
 0x2f7   : > { %s875_s30 = sshll.u32 %s442_s28, 4  ;;  %s877_s24 = sshll.u32 %s873_s27, 4  ;;  %s876_s30 = int_to_ptr.vmem [resolvable:$true] %s875_s30  ;;  %s878_s24 = int_to_ptr.hbm [resolvable:$true] %s877_s24 }
 0x2f8   : > { %s850_s10 = scalar_lea.sflag [#allocation16], %s1829_s23  ;;  %s1579_s16 = sshra.s32 %s878_s24, 4  ;;  %s1580_s16 = int_to_ptr.hbm [resolvable:$true] %s1579_s16 }
 0x2f9   : > { %s1581_s25 = scalar_lea.hbm %s1580_s16, 8  ;;  %s1585_s1 = scalar_lea.hbm %s1919_s9, 16 }
 0x2fa   : > { %p1582_p10 = scmp.ne.s32.totalorder %s1580_s16, %s1581_s25  ;;  %p1586_p2 = scmp.lt.s32.totalorder %s1580_s16, %s1919_s9 }
 0x2fb   : > { %p1587_p6 = scmp.lt.s32.totalorder %s1585_s1, %s1581_s25 }
 0x2fc   : > { %p1583_p11 = pnand %p1582_p10, %p1798_p13 }
 0x2fd   : > { %p1588_p1 = por %p1587_p6, %p1586_p2 }
 0x2fe   : > { %p1584_p0 = pneg %p1583_p11 }
 0x300   : > { %p1589_p3 = pnand %p1588_p1, %p1584_p0 }
 0x369   : > { %v841_v56 = vpop.xlane.xlu1 %840 }
 0x36a   : > { %v842_v57 = vmul.f32 %v841_v56, %v1855_v29 }
 0x36c   : > { %844 = vst [vmem:[%s442_s28] sm:$0xff] %v842_v57 }
 0x36d   : > { %1592 = shalt.err (!%p1589_p3)
}
 0x36e   : > { %1269 = dma.vmem_to_hbm [thread:$0]  (%p1798_p13), %s876_s30, 128, %s878_s24, %s850_s10  }
 0x36f PF: > { %s889_s23 = sand.u32 1, %s1635_s11   ;;  %p1930_p5 = scmp.ge.s32.totalorder %s1647_s14, 2 }
 0x370   : > { %s890_s21 = scalar_lea.sflag [#allocation5], %s889_s23 }
 0x371   : > { %p1293_p12 = pnand %p1930_p5, %p1803_p4 }
 0x373   : > { %p1294_p8 = pneg %p1293_p12 }
 0x375   : > { %1626 = dma.done.wait (%p1294_p8), %s890_s21, 16  }
 0x376   : > { %1628 = vsyncadd (%p1294_p8), %s890_s21, 4294967280  ;;  %s899_s29 = scalar_lea.sflag [#allocation16], %s889_s23 }
 0x377   : > { %1630 = dma.done.wait (%p1294_p8), %s899_s29, 128  }
 0x378   : > { %1632 = vsyncadd (%p1294_p8), %s899_s29, 4294967168  ;;  %p31_p13 = scmp.ge.s32.totalorder %s1778_s19, 4   ;;  %s1931_s11 = smov %s1639_s12 }
 0x379   : > { %s1932_s12 = smov %s1643_s13  ;;  %s1933_s13 = smov %s1790_s7 }
 0x37a   : > { %s1934_s14 = smov %s1778_s19  ;;  %33 = sbr.rel (!%p31_p13) target bundleno = 13 (0xd), region = 134 }
 0x37f   :  { %905 = vsyncpa [#allocation4], 1 }
 0x380   :  { %907 = vsyncpa [#allocation4 + $0x1], 1 }
 0x381   :  { %908 = vsyncpa [#allocation7], 1 }
 0x382   :  { %909 = vsyncpa [#allocation10], 1 }
 0x383   :  { %910 = vsyncpa [#allocation13], 1 }
 0x384   :  { %911 = vsyncpa [#allocation5], 1 }
 0x385   :  { %913 = vsyncpa [#allocation5 + $0x1], 1 }
 0x386   :  { %914 = vsyncpa [#allocation16], 1 }
 0x387   :  { %916 = vsyncpa [#allocation16 + $0x1], 1 }

</bundles_post_ra>
